<compile_context>
chip_gen: v7x
topology: tpu7x:2x2x1
jax: 0.10.0
libtpu: 0.0.40
codegen_flags: <defaults>
</compile_context>

<pallas_src>
import functools

import jax
import jax.numpy as jnp
from jax.experimental import pallas as pl
from jax.experimental.pallas import tpu as pltpu

LEAKY_SLOPE = 0.01  # PyTorch nn.LeakyReLU default


def _apply_act(x, act):
    if act == "relu":
        return jnp.maximum(x, 0.0)
    if act == "leaky":
        # max(x, slope*x) == leaky_relu(x) for 0 < slope < 1 (single VALU op).
        return jnp.maximum(x, LEAKY_SLOPE * x)
    return x


def _num_m_blocks(M):
    # 2 parallel M blocks when the layer is big enough (keeps blocks 8-aligned);
    # lets v7x's second TensorCore participate, costs nothing meaningful on
    # v5e/v6e, and tiny layers stay at a single grid step.
    return 2 if (M >= 64 and M % 16 == 0) else 1


# ----------------------------- kernels ------------------------------------- #

@functools.lru_cache(maxsize=None)
def _make_conv_kernel(pre_act, post_act):
    """o = post_act(pre_act(A) @ W + b); full-K single block; bf16 MXU operands."""

    def kernel(a_ref, w_ref, b_ref, o_ref):
        a = _apply_act(a_ref[...], pre_act).astype(jnp.bfloat16)
        out = jnp.dot(a, w_ref[...], preferred_element_type=jnp.float32)
        out = out + b_ref[...]
        out = _apply_act(out, post_act)
        o_ref[...] = out.astype(o_ref.dtype)

    return kernel


@functools.lru_cache(maxsize=None)
def _make_resblock_kernel(with_proj):
    """Fused ResidualBlock: y = x + Conv1x1(ReLU(Conv3x3(ReLU(x)))).

    If with_proj: additionally o = Conv1x1(LeakyReLU(y)) + b  (the Encoder's
    final projection) — all inside one kernel invocation.
    """

    def kernel(a_ref, x_ref, w1_ref, w2_ref, *rest):
        if with_proj:
            wp_ref, bp_ref, o_ref = rest
        else:
            (o_ref,) = rest

        # ReLU -> Conv3x3 as matmul over im2col patches of raw x.
        # (relu(0) == 0, so zero spatial padding commutes with the activation.)
        a = jnp.maximum(a_ref[...], 0.0).astype(jnp.bfloat16)
        t = jnp.dot(a, w1_ref[...], preferred_element_type=jnp.float32)

        # ReLU -> Conv1x1
        t = jnp.maximum(t, 0.0).astype(jnp.bfloat16)
        u = jnp.dot(t, w2_ref[...], preferred_element_type=jnp.float32)

        # residual add
        y = x_ref[...] + u

        if with_proj:
            z = jnp.maximum(y, LEAKY_SLOPE * y).astype(jnp.bfloat16)  # LeakyReLU
            z = jnp.dot(z, wp_ref[...], preferred_element_type=jnp.float32)
            z = z + bp_ref[...]
            o_ref[...] = z.astype(o_ref.dtype)
        else:
            o_ref[...] = y.astype(o_ref.dtype)

    return kernel


# --------------------------- pallas wrappers -------------------------------- #

def _conv_matmul(A, w_kn, bias_1n, pre_act="none", post_act="none"):
    """A: (M, K) f32, w_kn: (K, N) bf16, bias_1n: (1, N) f32 -> (M, N) f32."""
    M, K = A.shape
    N = w_kn.shape[1]
    nm = _num_m_blocks(M)
    TM = M // nm
    return pl.pallas_call(
        _make_conv_kernel(pre_act, post_act),
        out_shape=jax.ShapeDtypeStruct((M, N), jnp.float32),
        grid_spec=pltpu.PrefetchScalarGridSpec(
            num_scalar_prefetch=0,
            grid=(nm,),
            in_specs=[
                pl.BlockSpec((TM, K), lambda i: (i, 0)),
                pl.BlockSpec((K, N), lambda i: (0, 0)),
                pl.BlockSpec((1, N), lambda i: (0, 0)),
            ],
            out_specs=pl.BlockSpec((TM, N), lambda i: (i, 0)),
        ),
        compiler_params=pltpu.CompilerParams(
            dimension_semantics=("parallel",)),
    )(A, w_kn, bias_1n)


def _resblock_matmul(A, x2d, w1_kn, w2_nn, wp_kn=None, bp_1n=None):
    """Fused residual block (+ optional fused projection)."""
    M, K1 = A.shape
    C = x2d.shape[1]
    nm = _num_m_blocks(M)
    TM = M // nm
    with_proj = wp_kn is not None

    inputs = [A, x2d, w1_kn, w2_nn]
    in_specs = [
        pl.BlockSpec((TM, K1), lambda i: (i, 0)),
        pl.BlockSpec((TM, C), lambda i: (i, 0)),
        pl.BlockSpec((K1, C), lambda i: (0, 0)),
        pl.BlockSpec((C, C), lambda i: (0, 0)),
    ]
    if with_proj:
        Nout = wp_kn.shape[1]
        inputs += [wp_kn, bp_1n]
        in_specs += [
            pl.BlockSpec((C, Nout), lambda i: (0, 0)),
            pl.BlockSpec((1, Nout), lambda i: (0, 0)),
        ]
    else:
        Nout = C

    return pl.pallas_call(
        _make_resblock_kernel(with_proj),
        out_shape=jax.ShapeDtypeStruct((M, Nout), jnp.float32),
        grid_spec=pltpu.PrefetchScalarGridSpec(
            num_scalar_prefetch=0,
            grid=(nm,),
            in_specs=in_specs,
            out_specs=pl.BlockSpec((TM, Nout), lambda i: (i, 0)),
        ),
        compiler_params=pltpu.CompilerParams(
            dimension_semantics=("parallel",)),
    )(*inputs)


# ------------------------------ conv glue ----------------------------------- #

def _im2col_nhwc(x, KH, KW, stride, pad):
    """x: (B, H, W, C) -> patches (B*OH*OW, KH*KW*C) ordered (kh, kw, ci)."""
    B, H, W, C = x.shape
    OH = (H + 2 * pad - KH) // stride + 1
    OW = (W + 2 * pad - KW) // stride + 1
    xp = jnp.pad(x, ((0, 0), (pad, pad), (pad, pad), (0, 0))) if pad else x
    cols = []
    for kh in range(KH):
        for kw in range(KW):
            cols.append(
                xp[:, kh:kh + stride * OH:stride, kw:kw + stride * OW:stride, :])
    patches = jnp.concatenate(cols, axis=-1)  # (B, OH, OW, KH*KW*C)
    return patches.reshape(B * OH * OW, KH * KW * C), OH, OW


def conv2d(x_nhwc, w_kn, bias_1n, KH, KW, stride, pad,
           pre_act="none", post_act="none"):
    """Conv2d on NHWC input with kernel-ready (K, N) weights."""
    B = x_nhwc.shape[0]
    Cout = w_kn.shape[1]
    A, OH, OW = _im2col_nhwc(x_nhwc, KH, KW, stride, pad)
    out = _conv_matmul(A, w_kn, bias_1n, pre_act=pre_act, post_act=post_act)
    return out.reshape(B, OH, OW, Cout)


def residual_block(x_nhwc, rb, proj=None):
    """x + Conv1x1(ReLU(Conv3x3(ReLU(x)))); optionally fuses the final proj."""
    B, H, W, C = x_nhwc.shape
    A, _, _ = _im2col_nhwc(x_nhwc, 3, 3, 1, 1)      # patches of raw x
    x2d = x_nhwc.reshape(B * H * W, C)               # residual path
    if proj is None:
        out = _resblock_matmul(A, x2d, rb["w1"], rb["w2"])
        return out.reshape(B, H, W, C)
    out = _resblock_matmul(A, x2d, rb["w1"], rb["w2"], proj["w"], proj["b"])
    return out.reshape(B, H, W, proj["w"].shape[1])


# ------------------------------ parameters ---------------------------------- #

def init_encoder_params(key, img_channels=3, hidden_dim=32, n_resblocks=2,
                        codebook_dim=16):
    """PyTorch-layout (OIHW) parameters."""
    h2 = hidden_dim // 2

    def conv_w(k, cout, cin, kh, kw):
        return 0.05 * jax.random.normal(k, (cout, cin, kh, kw), jnp.float32)

    def conv_b(k, cout):
        return 0.05 * jax.random.normal(k, (cout,), jnp.float32)

    keys = jax.random.split(key, 8 + 2 * n_resblocks)
    params = {
        "down1_w": conv_w(keys[0], h2, img_channels, 4, 4),
        "down1_b": conv_b(keys[1], h2),
        "down2_w": conv_w(keys[2], hidden_dim, h2, 4, 4),
        "down2_b": conv_b(keys[3], hidden_dim),
        "down3_w": conv_w(keys[4], hidden_dim, hidden_dim, 3, 3),
        "down3_b": conv_b(keys[5], hidden_dim),
        "proj_w": conv_w(keys[6], codebook_dim, hidden_dim, 1, 1),
        "proj_b": conv_b(keys[7], codebook_dim),
        "resblocks": [],
    }
    for i in range(n_resblocks):
        params["resblocks"].append({
            "w1": conv_w(keys[8 + 2 * i], hidden_dim, hidden_dim, 3, 3),  # bias=False
            "w2": conv_w(keys[9 + 2 * i], hidden_dim, hidden_dim, 1, 1),  # bias=False
        })
    return params


def _prep_w(w_oihw):
    # OIHW -> (KH*KW*Cin, Cout), rows ordered (kh, kw, cin); bf16 MXU operand.
    Cout, Cin, KH, KW = w_oihw.shape
    return (jnp.transpose(w_oihw, (2, 3, 1, 0))
            .reshape(KH * KW * Cin, Cout).astype(jnp.bfloat16))


def _prep_b(b):
    return b.reshape(1, -1).astype(jnp.float32)


def prepare_encoder_params(params):
    """One-time weight transform (hoisted out of the per-forward path)."""
    return {
        "down1_w": _prep_w(params["down1_w"]), "down1_b": _prep_b(params["down1_b"]),
        "down2_w": _prep_w(params["down2_w"]), "down2_b": _prep_b(params["down2_b"]),
        "down3_w": _prep_w(params["down3_w"]), "down3_b": _prep_b(params["down3_b"]),
        "proj_w": _prep_w(params["proj_w"]), "proj_b": _prep_b(params["proj_b"]),
        "resblocks": [{"w1": _prep_w(rb["w1"]), "w2": _prep_w(rb["w2"])}
                      for rb in params["resblocks"]],
    }


# ------------------------------- Encoder ------------------------------------ #

def encoder_forward(kp, x_nchw):
    # NCHW -> NHWC
    x = jnp.transpose(x_nchw, (0, 2, 3, 1))

    # downblocks: Conv(4,2,1) -> LeakyReLU -> Conv(4,2,1) -> LeakyReLU -> Conv(3,1,1)
    x = conv2d(x, kp["down1_w"], kp["down1_b"], 4, 4, stride=2, pad=1,
               post_act="leaky")
    x = conv2d(x, kp["down2_w"], kp["down2_b"], 4, 4, stride=2, pad=1,
               post_act="leaky")
    x = conv2d(x, kp["down3_w"], kp["down3_b"], 3, 3, stride=1, pad=1)

    # resblocks; the final LeakyReLU + Conv1x1 projection is fused into the
    # last residual block's kernel.
    n = len(kp["resblocks"])
    for i, rb in enumerate(kp["resblocks"]):
        if i == n - 1:
            x = residual_block(x, rb, proj={"w": kp["proj_w"], "b": kp["proj_b"]})
        else:
            x = residual_block(x, rb)
    if n == 0:  # no resblocks: standalone projection
        x = conv2d(x, kp["proj_w"], kp["proj_b"], 1, 1, stride=1, pad=0,
                   pre_act="leaky")

    # NHWC -> NCHW
    return jnp.transpose(x, (0, 3, 1, 2))


# ------------------------ pure-JAX reference (check) ------------------------ #

def _ref_conv(x_nchw, w_oihw, b, stride, pad):
    out = jax.lax.conv_general_dilated(
        x_nchw, w_oihw, window_strides=(stride, stride),
        padding=[(pad, pad), (pad, pad)],
        dimension_numbers=("NCHW", "OIHW", "NCHW"),
        precision=jax.lax.Precision.HIGHEST)
    if b is not None:
        out = out + b.reshape(1, -1, 1, 1)
    return out


def encoder_reference(p, x):
    leaky = lambda v: jnp.where(v > 0, v, LEAKY_SLOPE * v)
    x = leaky(_ref_conv(x, p["down1_w"], p["down1_b"], 2, 1))
    x = leaky(_ref_conv(x, p["down2_w"], p["down2_b"], 2, 1))
    x = _ref_conv(x, p["down3_w"], p["down3_b"], 1, 1)
    for rb in p["resblocks"]:
        t = jnp.maximum(x, 0.0)
        t = _ref_conv(t, rb["w1"], None, 1, 1)
        t = jnp.maximum(t, 0.0)
        t = _ref_conv(t, rb["w2"], None, 1, 0)
        x = x + t
    x = leaky(x)
    x = _ref_conv(x, p["proj_w"], p["proj_b"], 1, 0)
    return x


if __name__ == "__main__":
    key = jax.random.PRNGKey(0)
    k_params, k_x = jax.random.split(key)

    # Small config: img_channels=3, hidden_dim=32, n_resblocks=2, codebook_dim=16
    params = init_encoder_params(k_params, img_channels=3, hidden_dim=32,
                                 n_resblocks=2, codebook_dim=16)
    kparams = prepare_encoder_params(params)   # one-time weight prep

    x = jax.random.normal(k_x, (2, 3, 16, 16), jnp.float32)  # NCHW like PyTorch

    fwd = jax.jit(encoder_forward)
    out = fwd(kparams, x)
    out = jax.block_until_ready(out)

    assert out.shape == (2, 16, 4, 4), out.shape  # (B, codebook_dim, H/4, W/4)
    assert bool(jnp.all(jnp.isfinite(out)))

    # Correctness vs. pure-JAX reference (loose tolerance: bf16 MXU operands).
    ref = jax.block_until_ready(jax.jit(encoder_reference)(params, x))
    max_err = float(jnp.max(jnp.abs(out - ref)))
    assert max_err < 5e-2, max_err

    print("KERNEL_OK")
</pallas_src>

<mosaic_0001>
module attributes {stable_mosaic.version = 11 : i64} {
  func.func @kernel(%arg0: i32, %arg1: memref<64x48xf32, #tpu.memory_space<vmem>>, %arg2: memref<48x16xbf16, #tpu.memory_space<vmem>>, %arg3: memref<1x16xf32, #tpu.memory_space<vmem>>, %arg4: memref<64x16xf32, #tpu.memory_space<vmem>>) attributes {dimension_semantics = [#tpu.dimension_semantics<parallel>], iteration_bounds = array<i64: 2>, scalar_prefetch = 0 : i64, scratch_operands = 0 : i64, tpu.core_type = #tpu.core_type<tc>, window_params = [{transform_indices = @transform_0, window_bounds = array<i64: 64, 48>}, {pipeline_mode = #tpu.pipeline_mode<synchronous>, transform_indices = @transform_1, window_bounds = array<i64: 48, 16>}, {pipeline_mode = #tpu.pipeline_mode<synchronous>, transform_indices = @transform_2, window_bounds = array<i64: 1, 16>}, {transform_indices = @transform_3, window_bounds = array<i64: 64, 16>}]} {
    %c0 = arith.constant 0 : index
    %c0_0 = arith.constant 0 : index
    %0 = vector.load %arg1[%c0, %c0_0] : memref<64x48xf32, #tpu.memory_space<vmem>>, vector<64x48xf32>
    %1 = arith.truncf %0 : vector<64x48xf32> to vector<64x48xbf16>
    %c0_1 = arith.constant 0 : index
    %c0_2 = arith.constant 0 : index
    %2 = vector.load %arg2[%c0_1, %c0_2] : memref<48x16xbf16, #tpu.memory_space<vmem>>, vector<48x16xbf16>
    %cst = arith.constant dense<0.000000e+00> : vector<64x16xf32>
    %3 = tpu.matmul %1, %2, %cst {dimension_numbers = #tpu.dot_dimension_numbers<[1], [0], [0], [1], [0, 0, 1, 1], [], []>} : vector<64x48xbf16>, vector<48x16xbf16>, vector<64x16xf32> -> vector<64x16xf32>
    %c0_3 = arith.constant 0 : index
    %c0_4 = arith.constant 0 : index
    %4 = vector.load %arg3[%c0_3, %c0_4] : memref<1x16xf32, #tpu.memory_space<vmem>>, vector<1x16xf32>
    %5 = vector.broadcast %4 : vector<1x16xf32> to vector<64x16xf32>
    %6 = arith.addf %3, %5 : vector<64x16xf32>
    %cst_5 = arith.constant 0.00999999977 : f32
    %7 = vector.broadcast %cst_5 : f32 to vector<64x16xf32>
    %8 = arith.mulf %7, %6 : vector<64x16xf32>
    %9 = arith.maximumf %6, %8 : vector<64x16xf32>
    %c0_6 = arith.constant 0 : index
    %c0_7 = arith.constant 0 : index
    %10 = vector.load %arg4[%c0_6, %c0_7] : memref<64x16xf32, #tpu.memory_space<vmem>>, vector<64x16xf32>
    tpu.vector_store %arg4[%c0_6, %c0_7], %9 {strides = array<i32>} : memref<64x16xf32, #tpu.memory_space<vmem>>, vector<64x16xf32>,
    return
  }
  func.func @transform_0(%arg0: i32) -> (i32, i32) {
    %c0_i32 = arith.constant 0 : i32
    %c0_i32_0 = arith.constant 0 : i32
    return %arg0, %c0_i32 : i32, i32
  }
  func.func @transform_1(%arg0: i32) -> (i32, i32) {
    %c0_i32 = arith.constant 0 : i32
    %c0_i32_0 = arith.constant 0 : i32
    %c0_i32_1 = arith.constant 0 : i32
    return %c0_i32, %c0_i32_0 : i32, i32
  }
  func.func @transform_2(%arg0: i32) -> (i32, i32) {
    %c0_i32 = arith.constant 0 : i32
    %c0_i32_0 = arith.constant 0 : i32
    %c0_i32_1 = arith.constant 0 : i32
    return %c0_i32, %c0_i32_0 : i32, i32
  }
  func.func @transform_3(%arg0: i32) -> (i32, i32) {
    %c0_i32 = arith.constant 0 : i32
    %c0_i32_0 = arith.constant 0 : i32
    return %arg0, %c0_i32 : i32, i32
  }
}

module attributes {stable_mosaic.version = 11 : i64} {
  func.func @kernel(%arg0: i32, %arg1: memref<32x256xf32, #tpu.memory_space<vmem>>, %arg2: memref<256x32xbf16, #tpu.memory_space<vmem>>, %arg3: memref<1x32xf32, #tpu.memory_space<vmem>>, %arg4: memref<32x32xf32, #tpu.memory_space<vmem>>) attributes {dimension_semantics = [#tpu.dimension_semantics<parallel>], iteration_bounds = array<i64: 1>, scalar_prefetch = 0 : i64, scratch_operands = 0 : i64, tpu.core_type = #tpu.core_type<tc>, window_params = [{transform_indices = @transform_0, window_bounds = array<i64: 32, 256>}, {pipeline_mode = #tpu.pipeline_mode<synchronous>, transform_indices = @transform_1, window_bounds = array<i64: 256, 32>}, {pipeline_mode = #tpu.pipeline_mode<synchronous>, transform_indices = @transform_2, window_bounds = array<i64: 1, 32>}, {transform_indices = @transform_3, window_bounds = array<i64: 32, 32>}]} {
    %c0 = arith.constant 0 : index
    %c0_0 = arith.constant 0 : index
    %0 = vector.load %arg1[%c0, %c0_0] : memref<32x256xf32, #tpu.memory_space<vmem>>, vector<32x256xf32>
    %1 = arith.truncf %0 : vector<32x256xf32> to vector<32x256xbf16>
    %c0_1 = arith.constant 0 : index
    %c0_2 = arith.constant 0 : index
    %2 = vector.load %arg2[%c0_1, %c0_2] : memref<256x32xbf16, #tpu.memory_space<vmem>>, vector<256x32xbf16>
    %cst = arith.constant dense<0.000000e+00> : vector<32x32xf32>
    %3 = tpu.matmul %1, %2, %cst {dimension_numbers = #tpu.dot_dimension_numbers<[1], [0], [0], [1], [0, 0, 1, 1], [], []>} : vector<32x256xbf16>, vector<256x32xbf16>, vector<32x32xf32> -> vector<32x32xf32>
    %c0_3 = arith.constant 0 : index
    %c0_4 = arith.constant 0 : index
    %4 = vector.load %arg3[%c0_3, %c0_4] : memref<1x32xf32, #tpu.memory_space<vmem>>, vector<1x32xf32>
    %5 = vector.broadcast %4 : vector<1x32xf32> to vector<32x32xf32>
    %6 = arith.addf %3, %5 : vector<32x32xf32>
    %cst_5 = arith.constant 0.00999999977 : f32
    %7 = vector.broadcast %cst_5 : f32 to vector<32x32xf32>
    %8 = arith.mulf %7, %6 : vector<32x32xf32>
    %9 = arith.maximumf %6, %8 : vector<32x32xf32>
    %c0_6 = arith.constant 0 : index
    %c0_7 = arith.constant 0 : index
    %10 = vector.load %arg4[%c0_6, %c0_7] : memref<32x32xf32, #tpu.memory_space<vmem>>, vector<32x32xf32>
    tpu.vector_store %arg4[%c0_6, %c0_7], %9 {strides = array<i32>} : memref<32x32xf32, #tpu.memory_space<vmem>>, vector<32x32xf32>,
    return
  }
  func.func @transform_0(%arg0: i32) -> (i32, i32) {
    %c0_i32 = arith.constant 0 : i32
    %c0_i32_0 = arith.constant 0 : i32
    return %arg0, %c0_i32 : i32, i32
  }
  func.func @transform_1(%arg0: i32) -> (i32, i32) {
    %c0_i32 = arith.constant 0 : i32
    %c0_i32_0 = arith.constant 0 : i32
    %c0_i32_1 = arith.constant 0 : i32
    return %c0_i32, %c0_i32_0 : i32, i32
  }
  func.func @transform_2(%arg0: i32) -> (i32, i32) {
    %c0_i32 = arith.constant 0 : i32
    %c0_i32_0 = arith.constant 0 : i32
    %c0_i32_1 = arith.constant 0 : i32
    return %c0_i32, %c0_i32_0 : i32, i32
  }
  func.func @transform_3(%arg0: i32) -> (i32, i32) {
    %c0_i32 = arith.constant 0 : i32
    %c0_i32_0 = arith.constant 0 : i32
    return %arg0, %c0_i32 : i32, i32
  }
}

module attributes {stable_mosaic.version = 11 : i64} {
  func.func @kernel(%arg0: i32, %arg1: memref<32x288xf32, #tpu.memory_space<vmem>>, %arg2: memref<288x32xbf16, #tpu.memory_space<vmem>>, %arg3: memref<1x32xf32, #tpu.memory_space<vmem>>, %arg4: memref<32x32xf32, #tpu.memory_space<vmem>>) attributes {dimension_semantics = [#tpu.dimension_semantics<parallel>], iteration_bounds = array<i64: 1>, scalar_prefetch = 0 : i64, scratch_operands = 0 : i64, tpu.core_type = #tpu.core_type<tc>, window_params = [{transform_indices = @transform_0, window_bounds = array<i64: 32, 288>}, {pipeline_mode = #tpu.pipeline_mode<synchronous>, transform_indices = @transform_1, window_bounds = array<i64: 288, 32>}, {pipeline_mode = #tpu.pipeline_mode<synchronous>, transform_indices = @transform_2, window_bounds = array<i64: 1, 32>}, {transform_indices = @transform_3, window_bounds = array<i64: 32, 32>}]} {
    %c0 = arith.constant 0 : index
    %c0_0 = arith.constant 0 : index
    %0 = vector.load %arg1[%c0, %c0_0] : memref<32x288xf32, #tpu.memory_space<vmem>>, vector<32x288xf32>
    %1 = arith.truncf %0 : vector<32x288xf32> to vector<32x288xbf16>
    %c0_1 = arith.constant 0 : index
    %c0_2 = arith.constant 0 : index
    %2 = vector.load %arg2[%c0_1, %c0_2] : memref<288x32xbf16, #tpu.memory_space<vmem>>, vector<288x32xbf16>
    %cst = arith.constant dense<0.000000e+00> : vector<32x32xf32>
    %3 = tpu.matmul %1, %2, %cst {dimension_numbers = #tpu.dot_dimension_numbers<[1], [0], [0], [1], [0, 0, 1, 1], [], []>} : vector<32x288xbf16>, vector<288x32xbf16>, vector<32x32xf32> -> vector<32x32xf32>
    %c0_3 = arith.constant 0 : index
    %c0_4 = arith.constant 0 : index
    %4 = vector.load %arg3[%c0_3, %c0_4] : memref<1x32xf32, #tpu.memory_space<vmem>>, vector<1x32xf32>
    %5 = vector.broadcast %4 : vector<1x32xf32> to vector<32x32xf32>
    %6 = arith.addf %3, %5 : vector<32x32xf32>
    %c0_5 = arith.constant 0 : index
    %c0_6 = arith.constant 0 : index
    %7 = vector.load %arg4[%c0_5, %c0_6] : memref<32x32xf32, #tpu.memory_space<vmem>>, vector<32x32xf32>
    tpu.vector_store %arg4[%c0_5, %c0_6], %6 {strides = array<i32>} : memref<32x32xf32, #tpu.memory_space<vmem>>, vector<32x32xf32>,
    return
  }
  func.func @transform_0(%arg0: i32) -> (i32, i32) {
    %c0_i32 = arith.constant 0 : i32
    %c0_i32_0 = arith.constant 0 : i32
    return %arg0, %c0_i32 : i32, i32
  }
  func.func @transform_1(%arg0: i32) -> (i32, i32) {
    %c0_i32 = arith.constant 0 : i32
    %c0_i32_0 = arith.constant 0 : i32
    %c0_i32_1 = arith.constant 0 : i32
    return %c0_i32, %c0_i32_0 : i32, i32
  }
  func.func @transform_2(%arg0: i32) -> (i32, i32) {
    %c0_i32 = arith.constant 0 : i32
    %c0_i32_0 = arith.constant 0 : i32
    %c0_i32_1 = arith.constant 0 : i32
    return %c0_i32, %c0_i32_0 : i32, i32
  }
  func.func @transform_3(%arg0: i32) -> (i32, i32) {
    %c0_i32 = arith.constant 0 : i32
    %c0_i32_0 = arith.constant 0 : i32
    return %arg0, %c0_i32 : i32, i32
  }
}

module attributes {stable_mosaic.version = 11 : i64} {
  func.func @kernel(%arg0: i32, %arg1: memref<32x288xf32, #tpu.memory_space<vmem>>, %arg2: memref<32x32xf32, #tpu.memory_space<vmem>>, %arg3: memref<288x32xbf16, #tpu.memory_space<vmem>>, %arg4: memref<32x32xbf16, #tpu.memory_space<vmem>>, %arg5: memref<32x32xf32, #tpu.memory_space<vmem>>) attributes {dimension_semantics = [#tpu.dimension_semantics<parallel>], iteration_bounds = array<i64: 1>, scalar_prefetch = 0 : i64, scratch_operands = 0 : i64, tpu.core_type = #tpu.core_type<tc>, window_params = [{transform_indices = @transform_0, window_bounds = array<i64: 32, 288>}, {transform_indices = @transform_1, window_bounds = array<i64: 32, 32>}, {pipeline_mode = #tpu.pipeline_mode<synchronous>, transform_indices = @transform_2, window_bounds = array<i64: 288, 32>}, {pipeline_mode = #tpu.pipeline_mode<synchronous>, transform_indices = @transform_3, window_bounds = array<i64: 32, 32>}, {transform_indices = @transform_4, window_bounds = array<i64: 32, 32>}]} {
    %c0 = arith.constant 0 : index
    %c0_0 = arith.constant 0 : index
    %0 = vector.load %arg1[%c0, %c0_0] : memref<32x288xf32, #tpu.memory_space<vmem>>, vector<32x288xf32>
    %cst = arith.constant 0.000000e+00 : f32
    %1 = vector.broadcast %cst : f32 to vector<32x288xf32>
    %2 = arith.maximumf %0, %1 : vector<32x288xf32>
    %3 = arith.truncf %2 : vector<32x288xf32> to vector<32x288xbf16>
    %c0_1 = arith.constant 0 : index
    %c0_2 = arith.constant 0 : index
    %4 = vector.load %arg3[%c0_1, %c0_2] : memref<288x32xbf16, #tpu.memory_space<vmem>>, vector<288x32xbf16>
    %cst_3 = arith.constant dense<0.000000e+00> : vector<32x32xf32>
    %5 = tpu.matmul %3, %4, %cst_3 {dimension_numbers = #tpu.dot_dimension_numbers<[1], [0], [0], [1], [0, 0, 1, 1], [], []>} : vector<32x288xbf16>, vector<288x32xbf16>, vector<32x32xf32> -> vector<32x32xf32>
    %cst_4 = arith.constant 0.000000e+00 : f32
    %6 = vector.broadcast %cst_4 : f32 to vector<32x32xf32>
    %7 = arith.maximumf %5, %6 : vector<32x32xf32>
    %8 = arith.truncf %7 : vector<32x32xf32> to vector<32x32xbf16>
    %c0_5 = arith.constant 0 : index
    %c0_6 = arith.constant 0 : index
    %9 = vector.load %arg4[%c0_5, %c0_6] : memref<32x32xbf16, #tpu.memory_space<vmem>>, vector<32x32xbf16>
    %cst_7 = arith.constant dense<0.000000e+00> : vector<32x32xf32>
    %10 = tpu.matmul %8, %9, %cst_7 {dimension_numbers = #tpu.dot_dimension_numbers<[1], [0], [0], [1], [0, 0, 1, 1], [], []>} : vector<32x32xbf16>, vector<32x32xbf16>, vector<32x32xf32> -> vector<32x32xf32>
    %c0_8 = arith.constant 0 : index
    %c0_9 = arith.constant 0 : index
    %11 = vector.load %arg2[%c0_8, %c0_9] : memref<32x32xf32, #tpu.memory_space<vmem>>, vector<32x32xf32>
    %12 = arith.addf %11, %10 : vector<32x32xf32>
    %c0_10 = arith.constant 0 : index
    %c0_11 = arith.constant 0 : index
    %13 = vector.load %arg5[%c0_10, %c0_11] : memref<32x32xf32, #tpu.memory_space<vmem>>, vector<32x32xf32>
    tpu.vector_store %arg5[%c0_10, %c0_11], %12 {strides = array<i32>} : memref<32x32xf32, #tpu.memory_space<vmem>>, vector<32x32xf32>,
    return
  }
  func.func @transform_0(%arg0: i32) -> (i32, i32) {
    %c0_i32 = arith.constant 0 : i32
    %c0_i32_0 = arith.constant 0 : i32
    return %arg0, %c0_i32 : i32, i32
  }
  func.func @transform_1(%arg0: i32) -> (i32, i32) {
    %c0_i32 = arith.constant 0 : i32
    %c0_i32_0 = arith.constant 0 : i32
    return %arg0, %c0_i32 : i32, i32
  }
  func.func @transform_2(%arg0: i32) -> (i32, i32) {
    %c0_i32 = arith.constant 0 : i32
    %c0_i32_0 = arith.constant 0 : i32
    %c0_i32_1 = arith.constant 0 : i32
    return %c0_i32, %c0_i32_0 : i32, i32
  }
  func.func @transform_3(%arg0: i32) -> (i32, i32) {
    %c0_i32 = arith.constant 0 : i32
    %c0_i32_0 = arith.constant 0 : i32
    %c0_i32_1 = arith.constant 0 : i32
    return %c0_i32, %c0_i32_0 : i32, i32
  }
  func.func @transform_4(%arg0: i32) -> (i32, i32) {
    %c0_i32 = arith.constant 0 : i32
    %c0_i32_0 = arith.constant 0 : i32
    return %arg0, %c0_i32 : i32, i32
  }
}

module attributes {stable_mosaic.version = 11 : i64} {
  func.func @kernel(%arg0: i32, %arg1: memref<32x288xf32, #tpu.memory_space<vmem>>, %arg2: memref<32x32xf32, #tpu.memory_space<vmem>>, %arg3: memref<288x32xbf16, #tpu.memory_space<vmem>>, %arg4: memref<32x32xbf16, #tpu.memory_space<vmem>>, %arg5: memref<32x16xbf16, #tpu.memory_space<vmem>>, %arg6: memref<1x16xf32, #tpu.memory_space<vmem>>, %arg7: memref<32x16xf32, #tpu.memory_space<vmem>>) attributes {dimension_semantics = [#tpu.dimension_semantics<parallel>], iteration_bounds = array<i64: 1>, scalar_prefetch = 0 : i64, scratch_operands = 0 : i64, tpu.core_type = #tpu.core_type<tc>, window_params = [{transform_indices = @transform_0, window_bounds = array<i64: 32, 288>}, {transform_indices = @transform_1, window_bounds = array<i64: 32, 32>}, {pipeline_mode = #tpu.pipeline_mode<synchronous>, transform_indices = @transform_2, window_bounds = array<i64: 288, 32>}, {pipeline_mode = #tpu.pipeline_mode<synchronous>, transform_indices = @transform_3, window_bounds = array<i64: 32, 32>}, {pipeline_mode = #tpu.pipeline_mode<synchronous>, transform_indices = @transform_4, window_bounds = array<i64: 32, 16>}, {pipeline_mode = #tpu.pipeline_mode<synchronous>, transform_indices = @transform_5, window_bounds = array<i64: 1, 16>}, {transform_indices = @transform_6, window_bounds = array<i64: 32, 16>}]} {
    %c0 = arith.constant 0 : index
    %c0_0 = arith.constant 0 : index
    %0 = vector.load %arg1[%c0, %c0_0] : memref<32x288xf32, #tpu.memory_space<vmem>>, vector<32x288xf32>
    %cst = arith.constant 0.000000e+00 : f32
    %1 = vector.broadcast %cst : f32 to vector<32x288xf32>
    %2 = arith.maximumf %0, %1 : vector<32x288xf32>
    %3 = arith.truncf %2 : vector<32x288xf32> to vector<32x288xbf16>
    %c0_1 = arith.constant 0 : index
    %c0_2 = arith.constant 0 : index
    %4 = vector.load %arg3[%c0_1, %c0_2] : memref<288x32xbf16, #tpu.memory_space<vmem>>, vector<288x32xbf16>
    %cst_3 = arith.constant dense<0.000000e+00> : vector<32x32xf32>
    %5 = tpu.matmul %3, %4, %cst_3 {dimension_numbers = #tpu.dot_dimension_numbers<[1], [0], [0], [1], [0, 0, 1, 1], [], []>} : vector<32x288xbf16>, vector<288x32xbf16>, vector<32x32xf32> -> vector<32x32xf32>
    %cst_4 = arith.constant 0.000000e+00 : f32
    %6 = vector.broadcast %cst_4 : f32 to vector<32x32xf32>
    %7 = arith.maximumf %5, %6 : vector<32x32xf32>
    %8 = arith.truncf %7 : vector<32x32xf32> to vector<32x32xbf16>
    %c0_5 = arith.constant 0 : index
    %c0_6 = arith.constant 0 : index
    %9 = vector.load %arg4[%c0_5, %c0_6] : memref<32x32xbf16, #tpu.memory_space<vmem>>, vector<32x32xbf16>
    %cst_7 = arith.constant dense<0.000000e+00> : vector<32x32xf32>
    %10 = tpu.matmul %8, %9, %cst_7 {dimension_numbers = #tpu.dot_dimension_numbers<[1], [0], [0], [1], [0, 0, 1, 1], [], []>} : vector<32x32xbf16>, vector<32x32xbf16>, vector<32x32xf32> -> vector<32x32xf32>
    %c0_8 = arith.constant 0 : index
    %c0_9 = arith.constant 0 : index
    %11 = vector.load %arg2[%c0_8, %c0_9] : memref<32x32xf32, #tpu.memory_space<vmem>>, vector<32x32xf32>
    %12 = arith.addf %11, %10 : vector<32x32xf32>
    %cst_10 = arith.constant 0.00999999977 : f32
    %13 = vector.broadcast %cst_10 : f32 to vector<32x32xf32>
    %14 = arith.mulf %13, %12 : vector<32x32xf32>
    %15 = arith.maximumf %12, %14 : vector<32x32xf32>
    %16 = arith.truncf %15 : vector<32x32xf32> to vector<32x32xbf16>
    %c0_11 = arith.constant 0 : index
    %c0_12 = arith.constant 0 : index
    %17 = vector.load %arg5[%c0_11, %c0_12] : memref<32x16xbf16, #tpu.memory_space<vmem>>, vector<32x16xbf16>
    %cst_13 = arith.constant dense<0.000000e+00> : vector<32x16xf32>
    %18 = tpu.matmul %16, %17, %cst_13 {dimension_numbers = #tpu.dot_dimension_numbers<[1], [0], [0], [1], [0, 0, 1, 1], [], []>} : vector<32x32xbf16>, vector<32x16xbf16>, vector<32x16xf32> -> vector<32x16xf32>
    %c0_14 = arith.constant 0 : index
    %c0_15 = arith.constant 0 : index
    %19 = vector.load %arg6[%c0_14, %c0_15] : memref<1x16xf32, #tpu.memory_space<vmem>>, vector<1x16xf32>
    %20 = vector.broadcast %19 : vector<1x16xf32> to vector<32x16xf32>
    %21 = arith.addf %18, %20 : vector<32x16xf32>
    %c0_16 = arith.constant 0 : index
    %c0_17 = arith.constant 0 : index
    %22 = vector.load %arg7[%c0_16, %c0_17] : memref<32x16xf32, #tpu.memory_space<vmem>>, vector<32x16xf32>
    tpu.vector_store %arg7[%c0_16, %c0_17], %21 {strides = array<i32>} : memref<32x16xf32, #tpu.memory_space<vmem>>, vector<32x16xf32>,
    return
  }
  func.func @transform_0(%arg0: i32) -> (i32, i32) {
    %c0_i32 = arith.constant 0 : i32
    %c0_i32_0 = arith.constant 0 : i32
    return %arg0, %c0_i32 : i32, i32
  }
  func.func @transform_1(%arg0: i32) -> (i32, i32) {
    %c0_i32 = arith.constant 0 : i32
    %c0_i32_0 = arith.constant 0 : i32
    return %arg0, %c0_i32 : i32, i32
  }
  func.func @transform_2(%arg0: i32) -> (i32, i32) {
    %c0_i32 = arith.constant 0 : i32
    %c0_i32_0 = arith.constant 0 : i32
    %c0_i32_1 = arith.constant 0 : i32
    return %c0_i32, %c0_i32_0 : i32, i32
  }
  func.func @transform_3(%arg0: i32) -> (i32, i32) {
    %c0_i32 = arith.constant 0 : i32
    %c0_i32_0 = arith.constant 0 : i32
    %c0_i32_1 = arith.constant 0 : i32
    return %c0_i32, %c0_i32_0 : i32, i32
  }
  func.func @transform_4(%arg0: i32) -> (i32, i32) {
    %c0_i32 = arith.constant 0 : i32
    %c0_i32_0 = arith.constant 0 : i32
    %c0_i32_1 = arith.constant 0 : i32
    return %c0_i32, %c0_i32_0 : i32, i32
  }
  func.func @transform_5(%arg0: i32) -> (i32, i32) {
    %c0_i32 = arith.constant 0 : i32
    %c0_i32_0 = arith.constant 0 : i32
    %c0_i32_1 = arith.constant 0 : i32
    return %c0_i32, %c0_i32_0 : i32, i32
  }
  func.func @transform_6(%arg0: i32) -> (i32, i32) {
    %c0_i32 = arith.constant 0 : i32
    %c0_i32_0 = arith.constant 0 : i32
    return %arg0, %c0_i32 : i32, i32
  }
}

</mosaic_0001>

<bundles_post_ra>
// kernel: encoder_forward.5
= control target key start
LH: loop header
LB: loop body
LE: loop exit
PB: predicated region body
PF: predicated region fallthrough
CT: control target
= control target key end

     0   :  { %s462_s12 = smov 0   ;;  %s510_s0 = inlined_call_operand.vmem [shape: f32[128,48], index: 0, kind: input, shape index: {}]   ;;  %s511_s1 = inlined_call_operand.vmem [shape: bf16[48,16], index: 1, kind: input, shape index: {}]   ;;  %s512_s2 = inlined_call_operand.vmem [shape: f32[1,16], index: 2, kind: input, shape index: {}]   ;;  %s513_s3 = inlined_call_operand.vmem [shape: f32[128,16], index: 3, kind: output, shape index: {}]  }
   0x1 LB: > { %s377_s13 = sadd.s32 4294967295, %s440_s12   ;;  %p381_p0 = scmp.ge.s32.totalorder %s440_s12, 1  ;;  %s440_s12 = sphi %s462_s12, %s13_s12  }
   0x2   : > { %p138_p1 = scmp.lt.s32.totalorder %s440_s12, 3 }
   0x4   : > { %p139_p2 = pnand %p381_p0, %p138_p1 }
   0x5   : > { %v431_v0 = vld [vmem:[%s511_s1] sm:$0xff] (!%p139_p2)   ;;  %s382_s16 = sshll.u32 (!%p139_p2), %s377_s13, 3  ;;  %v432_v1 = vld [vmem:[%s511_s1 + $0x8] sm:$0xff] (!%p139_p2)   ;;  %v433_v2 = vld [vmem:[%s511_s1 + $0x10] sm:$0xff] (!%p139_p2)   ;;  %vm218_vm0 = vcmask (!%p139_p2), 392192   ;;  %vm312_vm1 = vcmask (!%p139_p2), 130048  }
   0x6   : > { %142 = sbr.rel (%p139_p2) target bundleno = 243 (0xf3), region = 32  ;;  %p163_p3 = scmp.lt.s32.totalorder (!%p139_p2), %s382_s16, 15  ;;  %403 = vmatprep.subr.bf16.mxu0 (!%p139_p2), %v431_v0  ;;  %417 = vmatprep.subr.bf16.mxu1 (!%p139_p2), %v431_v0  ;;  %v386_v15 = vld [vmem:[%s512_s2] ss:$0 sm:$0xff] (!%p139_p2) }
   0x7   : > { %404 = vmatpush3.bf16.msra.mxu0 (!%p139_p2), %v431_v0  ;;  %420 = vmatpush3.bf16.msra.mxu1 (!%p139_p2), %v431_v0 }
   0x8   : > { %405 = vmatprep.subr.bf16.mxu0 (!%p139_p2), %v432_v1  ;;  %418 = vmatprep.subr.bf16.mxu1 (!%p139_p2), %v432_v1 }
   0xb   : > { %406 = vmatpush3.bf16.msra.mxu0 (!%p139_p2), %v432_v1  ;;  %421 = vmatpush3.bf16.msra.mxu1 (!%p139_p2), %v432_v1 }
   0xc   : > { %407 = vmatprep.subr.bf16.mxu0 (!%p139_p2), %v433_v2  ;;  %419 = vmatprep.subr.bf16.mxu1 (!%p139_p2), %v433_v2 }
   0xd   : > { %s515_s16 = smov (!%p163_p3, %s382_s16), 15 }
   0xe   : > { %s383_s21 = sshll.u32 %s515_s16, 3 }
   0xf   : > { %s166_s24 = scalar_lea.vmem %s510_s0, %s383_s21  ;;  %408 = vmatpush3.bf16.msra.mxu0 %v433_v2  ;;  %422 = vmatpush3.bf16.msra.mxu1 %v433_v2  ;;  %s172_s29 = scalar_lea.vmem %s513_s3, %s383_s21 }
  0x10   : > { %v175_v3 = vld [vmem:[%s166_s24] sm:$0xff]  ;;  %v176_v4 = vld [vmem:[%s166_s24 + $0x8] sm:$0xff]  ;;  %v177_v8 = vld [vmem:[%s166_s24 + $0x10] sm:$0xff] }
  0x11   : > { %v179_v5 = vld [vmem:[%s166_s24 + $0x20] sm:$0xff]  ;;  %v183_v6 = vpack.c.bf16 %v176_v4, %v175_v3  ;;  %v180_v7 = vld [vmem:[%s166_s24 + $0x28] sm:$0xff]  ;;  %v178_v9 = vld [vmem:[%s166_s24 + $0x18] sm:$0xff] }
  0x12   : > { %v185_v10 = vpack.c.bf16 %v180_v7, %v179_v5  ;;  %v181_v11 = vld [vmem:[%s166_s24 + $0x30] sm:$0xff]  ;;  %v182_v12 = vld [vmem:[%s166_s24 + $0x38] sm:$0xff]  ;;  %v184_v13 = vpack.c.bf16 %v178_v9, %v177_v8 }
  0x13   : > { %409 = vmatprep.mubr.msk.bf16.mxu0 %vm218_vm0, %v183_v6  ;;  %v186_v14 = vpack.c.bf16 %v182_v12, %v181_v11 }
  0x14   : > { %413 = vmatprep.mubr.msk.bf16.mxu1 %vm218_vm0, %v185_v10  ;;  %410 = vmatmul.mubr.msk.bf16.vlgmr.msra.gmra.mrb[0].mxu0 %vm218_vm0, %v184_v13 }
  0x15   : > { %414 = vmatmul.mubr.msk.bf16.vlgmr.msra.gmra.mrb[0].mxu1 %vm218_vm0, %v186_v14 }
  0xe7   : > { %v411_v16 = vpop.f32.mrb[0].mxu0 }
  0xe8   : > { %v415_v17 = vpop.f32.mrb[0].mxu1  ;;  %v274_v18 = vadd.f32 %v411_v16, %v386_v15  ;;  %v265_v20 = vpop.f32.mrb[1].mxu0 }
  0xe9   : > { %v290_v19 = vadd.f32 %v415_v17, %v386_v15  ;;  %v281_v21 = vpop.f32.mrb[1].mxu1  ;;  %v266_v22 = vadd.f32 %v386_v15, %v265_v20  ;;  %v412_v24 = vpop.f32.mrb[2].mxu0 }
  0xea   : > { %v282_v23 = vadd.f32 %v386_v15, %v281_v21  ;;  %v416_v25 = vpop.f32.mrb[2].mxu1  ;;  %v298_v26 = vmul.f32 0.01, %v274_v18  ;;  %v277_v28 = vadd.f32 %v412_v24, %v386_v15  ;;  %v268_v30 = vpop.f32.mrb[3].mxu0 }
  0xeb   : > { %v302_v27 = vmul.f32 0.01, %v290_v19  ;;  %v293_v29 = vadd.f32 %v416_v25, %v386_v15  ;;  %v284_v31 = vpop.f32.mrb[3].mxu1  ;;  %v296_v32 = vmul.f32 0.01, %v266_v22  ;;  %v269_v34 = vadd.f32 %v386_v15, %v268_v30 }
  0xec   : > { %v300_v33 = vmul.f32 0.01, %v282_v23  ;;  %v285_v35 = vadd.f32 %v386_v15, %v284_v31  ;;  %v306_v36 = vmax.f32 %v274_v18, %v298_v26  ;;  %v299_v38 = vmul.f32 0.01, %v277_v28 }
  0xed   : > { %v310_v37 = vmax.f32 %v290_v19, %v302_v27  ;;  %v303_v39 = vmul.f32 0.01, %v293_v29  ;;  %v304_v40 = vmax.f32 %v266_v22, %v296_v32  ;;  %v297_v42 = vmul.f32 0.01, %v269_v34 }
  0xee   : > { %v308_v41 = vmax.f32 %v282_v23, %v300_v33  ;;  %v301_v43 = vmul.f32 0.01, %v285_v35  ;;  %315 = vst.msk [vmem:[%s172_s29 + $0x10] sm:$0xff] %vm312_vm1, %v306_v36  ;;  %v307_v44 = vmax.f32 %v277_v28, %v299_v38 }
  0xef   : > { %319 = vst.msk [vmem:[%s172_s29 + $0x30] sm:$0xff] %vm312_vm1, %v310_v37  ;;  %v311_v45 = vmax.f32 %v293_v29, %v303_v39  ;;  %313 = vst.msk [vmem:[%s172_s29] sm:$0xff] %vm312_vm1, %v304_v40  ;;  %v305_v46 = vmax.f32 %v269_v34, %v297_v42 }
  0xf0   : > { %317 = vst.msk [vmem:[%s172_s29 + $0x20] sm:$0xff] %vm312_vm1, %v308_v41  ;;  %v309_v47 = vmax.f32 %v285_v35, %v301_v43  ;;  %316 = vst.msk [vmem:[%s172_s29 + $0x18] sm:$0xff] %vm312_vm1, %v307_v44 }
  0xf1   : > { %320 = vst.msk [vmem:[%s172_s29 + $0x38] sm:$0xff] %vm312_vm1, %v311_v45  ;;  %314 = vst.msk [vmem:[%s172_s29 + $0x8] sm:$0xff] %vm312_vm1, %v305_v46 }
  0xf2   : > { %318 = vst.msk [vmem:[%s172_s29 + $0x28] sm:$0xff] %vm312_vm1, %v309_v47 }
  0xf3 PF: > { %s13_s12 = sadd.s32 1, %s440_s12  }
  0xf4   : > { %p10_p4 = scmp.ge.s32.totalorder %s13_s12, 4  }
  0xf6   :  { %12 = sbr.rel (!%p10_p4) target bundleno = 1 (0x1), region = 62 }

// kernel: encoder_forward.6
= control target key start
LH: loop header
LB: loop body
LE: loop exit
PB: predicated region body
PF: predicated region fallthrough
CT: control target
= control target key end

     0   :  { %vm219_vm0 = vcmask 261120   ;;  %s412_s1 = inlined_call_operand.vmem [shape: bf16[256,32], index: 1, kind: input, shape index: {}]   ;;  %s413_s0 = inlined_call_operand.vmem [shape: f32[32,256], index: 0, kind: input, shape index: {}]   ;;  %s414_s2 = inlined_call_operand.vmem [shape: f32[1,32], index: 2, kind: input, shape index: {}]   ;;  %s415_s3 = inlined_call_operand.vmem [shape: f32[32,32], index: 3, kind: output, shape index: {}]  }
   0x1   :  { %v289_v0 = vld [vmem:[%s412_s1 + $0x40] sm:$0xff]   ;;  %v291_v2 = vld [vmem:[%s412_s1 + $0x48] sm:$0xff]   ;;  %v293_v4 = vld [vmem:[%s412_s1 + $0x50] sm:$0xff]  }
   0x2   :  { %v290_v1 = vld [vmem:[%s412_s1] sm:$0xff]   ;;  %245 = vmatprep.subr.bf16.mxu0 %v289_v0  ;;  %273 = vmatprep.subr.bf16.mxu1 %v289_v0  ;;  %v292_v3 = vld [vmem:[%s412_s1 + $0x8] sm:$0xff]   ;;  %v294_v5 = vld [vmem:[%s412_s1 + $0x10] sm:$0xff]  }
   0x3   :  { %246 = vmatpush3.bf16.msra.mxu0 %v290_v1  ;;  %281 = vmatpush3.bf16.msra.mxu1 %v290_v1  ;;  %v295_v6 = vld [vmem:[%s412_s1 + $0x58] sm:$0xff]   ;;  %v297_v8 = vld [vmem:[%s412_s1 + $0x60] sm:$0xff]   ;;  %v299_v10 = vld [vmem:[%s412_s1 + $0x68] sm:$0xff]  }
   0x4   :  { %247 = vmatprep.subr.bf16.mxu0 %v291_v2  ;;  %274 = vmatprep.subr.bf16.mxu1 %v291_v2  ;;  %v296_v7 = vld [vmem:[%s412_s1 + $0x18] sm:$0xff]   ;;  %v298_v9 = vld [vmem:[%s412_s1 + $0x20] sm:$0xff]   ;;  %v16_v11 = vld [vmem:[%s413_s0 + $0x8] sm:$0xff] }
   0x5   :  { %v18_v12 = vld [vmem:[%s413_s0 + $0x18] sm:$0xff]  ;;  %v20_v13 = vld [vmem:[%s413_s0 + $0x28] sm:$0xff]  ;;  %v301_v18 = vld [vmem:[%s412_s1 + $0x70] sm:$0xff]  }
   0x6   :  { %v24_v14 = vpack.c.bf16 %v18_v12, %v16_v11  ;;  %v22_v15 = vld [vmem:[%s413_s0 + $0x38] sm:$0xff]  ;;  %v300_v17 = vld [vmem:[%s412_s1 + $0x28] sm:$0xff]   ;;  %v302_v19 = vld [vmem:[%s412_s1 + $0x30] sm:$0xff]  }
   0x7   :  { %248 = vmatpush3.bf16.msra.mxu0 %v292_v3  ;;  %282 = vmatpush3.bf16.msra.mxu1 %v292_v3  ;;  %v26_v16 = vpack.c.bf16 %v22_v15, %v20_v13  ;;  %v303_v20 = vld [vmem:[%s412_s1 + $0x78] sm:$0xff]   ;;  %v15_v22 = vld [vmem:[%s413_s0] sm:$0xff]  ;;  %v17_v23 = vld [vmem:[%s413_s0 + $0x10] sm:$0xff] }
   0x8   :  { %249 = vmatprep.subr.bf16.mxu0 %v293_v4  ;;  %275 = vmatprep.subr.bf16.mxu1 %v293_v4  ;;  %v304_v21 = vld [vmem:[%s412_s1 + $0x38] sm:$0xff]   ;;  %v19_v24 = vld [vmem:[%s413_s0 + $0x20] sm:$0xff]  ;;  %v21_v25 = vld [vmem:[%s413_s0 + $0x30] sm:$0xff]  ;;  %v23_v26 = vpack.c.bf16 %v17_v23, %v15_v22 }
   0x9   :  { %194 = vmatprep.mubr.bf16.mxu0 %v24_v14  ;;  %202 = vmatprep.mubr.bf16.mxu1 %v26_v16  ;;  %v25_v27 = vpack.c.bf16 %v21_v25, %v19_v24  ;;  %v228_v30 = vld [vmem:[%s414_s2] ss:$0 sm:$0xff] }
   0xb   :  { %250 = vmatpush3.bf16.msra.mxu0 %v294_v5  ;;  %283 = vmatpush3.bf16.msra.mxu1 %v294_v5 }
   0xc   :  { %251 = vmatprep.subr.bf16.mxu0 %v295_v6  ;;  %276 = vmatprep.subr.bf16.mxu1 %v295_v6 }
   0xf   :  { %252 = vmatpush3.bf16.msra.mxu0 %v296_v7  ;;  %284 = vmatpush3.bf16.msra.mxu1 %v296_v7 }
  0x10   :  { %253 = vmatprep.subr.bf16.mxu0 %v297_v8  ;;  %277 = vmatprep.subr.bf16.mxu1 %v297_v8 }
  0x13   :  { %254 = vmatpush3.bf16.msra.mxu0 %v298_v9  ;;  %285 = vmatpush3.bf16.msra.mxu1 %v298_v9 }
  0x14   :  { %255 = vmatprep.subr.bf16.mxu0 %v299_v10  ;;  %278 = vmatprep.subr.bf16.mxu1 %v299_v10 }
  0x17   :  { %256 = vmatpush3.bf16.msra.mxu0 %v300_v17  ;;  %286 = vmatpush3.bf16.msra.mxu1 %v300_v17 }
  0x18   :  { %257 = vmatprep.subr.bf16.mxu0 %v301_v18  ;;  %279 = vmatprep.subr.bf16.mxu1 %v301_v18 }
  0x1b   :  { %258 = vmatpush3.bf16.msra.mxu0 %v302_v19  ;;  %287 = vmatpush3.bf16.msra.mxu1 %v302_v19 }
  0x1c   :  { %259 = vmatprep.subr.bf16.mxu0 %v303_v20  ;;  %280 = vmatprep.subr.bf16.mxu1 %v303_v20 }
  0x1f   :  { %260 = vmatpush3.bf16.msra.mxu0 %v304_v21  ;;  %288 = vmatpush3.bf16.msra.mxu1 %v304_v21 }
  0x22   :  { %195 = vmatmul.mubr.bf16.vlgmr.msra.gmra.mrb[0].mxu0 %v23_v26  ;;  %203 = vmatmul.mubr.bf16.vlgmr.msra.gmra.mrb[0].mxu1 %v25_v27 }
  0xf5   :  { %v261_v28 = vpop.f32.mrb[0].mxu0  ;;  %v267_v29 = vpop.f32.mrb[0].mxu1 }
  0xf6   :  { %v262_v31 = vpop.f32.mrb[1].mxu0  ;;  %v268_v32 = vpop.f32.mrb[1].mxu1 }
  0xf7   :  { %v263_v33 = vadd.f32 %v262_v31, %v261_v28  ;;  %v269_v34 = vadd.f32 %v268_v32, %v267_v29  ;;  %v264_v35 = vpop.f32.mrb[2].mxu0  ;;  %v270_v36 = vpop.f32.mrb[2].mxu1 }
  0xf8   :  { %v265_v37 = vpop.f32.mrb[3].mxu0  ;;  %v271_v38 = vpop.f32.mrb[3].mxu1 }
  0xf9   :  { %v197_v39 = vadd.f32 %v263_v33, %v228_v30  ;;  %v205_v40 = vadd.f32 %v269_v34, %v228_v30  ;;  %v266_v41 = vadd.f32 %v265_v37, %v264_v35  ;;  %v272_v42 = vadd.f32 %v271_v38, %v270_v36 }
  0xfb   :  { %v211_v43 = vmul.f32 0.01, %v197_v39  ;;  %v213_v44 = vmul.f32 0.01, %v205_v40  ;;  %v200_v45 = vadd.f32 %v266_v41, %v228_v30  ;;  %v208_v46 = vadd.f32 %v272_v42, %v228_v30 }
  0xfd   :  { %v215_v47 = vmax.f32 %v197_v39, %v211_v43  ;;  %v217_v48 = vmax.f32 %v205_v40, %v213_v44  ;;  %v212_v49 = vmul.f32 0.01, %v200_v45  ;;  %v214_v50 = vmul.f32 0.01, %v208_v46 }
  0xff   :  { %220 = vst.msk [vmem:[%s415_s3] sm:$0xff] %vm219_vm0, %v215_v47  ;;  %222 = vst.msk [vmem:[%s415_s3 + $0x10] sm:$0xff] %vm219_vm0, %v217_v48  ;;  %v216_v51 = vmax.f32 %v200_v45, %v212_v49  ;;  %v218_v52 = vmax.f32 %v208_v46, %v214_v50 }
 0x101   :  { %221 = vst.msk [vmem:[%s415_s3 + $0x8] sm:$0xff] %vm219_vm0, %v216_v51  ;;  %223 = vst.msk [vmem:[%s415_s3 + $0x18] sm:$0xff] %vm219_vm0, %v218_v52 }

// kernel: encoder_forward.7
= control target key start
LH: loop header
LB: loop body
LE: loop exit
PB: predicated region body
PF: predicated region fallthrough
CT: control target
= control target key end

     0   :  { %vm184_vm0 = vcmask 261120   ;;  %s507_s1 = inlined_call_operand.vmem [shape: bf16[288,32], index: 1, kind: input, shape index: {}]   ;;  %s508_s0 = inlined_call_operand.vmem [shape: f32[32,288], index: 0, kind: input, shape index: {}]   ;;  %s509_s2 = inlined_call_operand.vmem [shape: f32[1,32], index: 2, kind: input, shape index: {}]   ;;  %s510_s3 = inlined_call_operand.vmem [shape: f32[32,32], index: 3, kind: output, shape index: {}]  }
   0x1   :  { %v358_v0 = vld [vmem:[%s507_s1 + $0x40] sm:$0xff]   ;;  %v360_v2 = vld [vmem:[%s507_s1 + $0x48] sm:$0xff]   ;;  %v362_v4 = vld [vmem:[%s507_s1 + $0x50] sm:$0xff]  }
   0x2   :  { %v359_v1 = vld [vmem:[%s507_s1] sm:$0xff]   ;;  %318 = vmatprep.subr.bf16.mxu0 %v358_v0  ;;  %v361_v3 = vld [vmem:[%s507_s1 + $0x8] sm:$0xff]   ;;  %v363_v5 = vld [vmem:[%s507_s1 + $0x10] sm:$0xff]  }
   0x3   :  { %319 = vmatpush3.bf16.msra.mxu0 %v359_v1  ;;  %v364_v6 = vld [vmem:[%s507_s1 + $0x58] sm:$0xff]   ;;  %v366_v8 = vld [vmem:[%s507_s1 + $0x60] sm:$0xff]   ;;  %v368_v11 = vld [vmem:[%s507_s1 + $0x68] sm:$0xff]  }
   0x4   :  { %320 = vmatprep.subr.bf16.mxu0 %v360_v2  ;;  %v365_v7 = vld [vmem:[%s507_s1 + $0x18] sm:$0xff]   ;;  %v367_v9 = vld [vmem:[%s507_s1 + $0x20] sm:$0xff]   ;;  %v16_v12 = vld [vmem:[%s508_s0 + $0x8] sm:$0xff] }
   0x5   :  { %v373_v10 = vld [vmem:[%s507_s1 + $0x80] sm:$0xff]   ;;  %v369_v14 = vld [vmem:[%s507_s1 + $0x28] sm:$0xff]   ;;  %v17_v17 = vld [vmem:[%s508_s0 + $0x10] sm:$0xff] }
   0x6   :  { %350 = vmatprep.subr.bf16.mxu1 %v373_v10  ;;  %v19_v13 = vld [vmem:[%s508_s0 + $0x20] sm:$0xff]  ;;  %v375_v16 = vld [vmem:[%s507_s1 + $0x88] sm:$0xff]   ;;  %v370_v19 = vld [vmem:[%s507_s1 + $0x70] sm:$0xff]  }
   0x7   :  { %321 = vmatpush3.bf16.msra.mxu0 %v361_v3  ;;  %351 = vmatpush3.bf16.msra.mxu1 %v373_v10  ;;  %v28_v15 = vpack.c.bf16 %v19_v13, %v16_v12  ;;  %v20_v18 = vld [vmem:[%s508_s0 + $0x28] sm:$0xff]  ;;  %v23_v21 = vld [vmem:[%s508_s0 + $0x40] sm:$0xff]  ;;  %v26_v22 = vld [vmem:[%s508_s0 + $0x58] sm:$0xff] }
   0x8   :  { %322 = vmatprep.subr.bf16.mxu0 %v362_v4  ;;  %v29_v20 = vpack.c.bf16 %v20_v18, %v17_v17  ;;  %352 = vmatprep.subr.bf16.mxu1 %v375_v16  ;;  %v32_v23 = vpack.c.bf16 %v26_v22, %v23_v21  ;;  %v371_v24 = vld [vmem:[%s507_s1 + $0x30] sm:$0xff]   ;;  %v372_v25 = vld [vmem:[%s507_s1 + $0x78] sm:$0xff]   ;;  %v15_v27 = vld [vmem:[%s508_s0] sm:$0xff] }
   0x9   :  { %223 = vmatprep.mubr.bf16.mxu0 %v28_v15  ;;  %v374_v26 = vld [vmem:[%s507_s1 + $0x38] sm:$0xff]   ;;  %v25_v30 = vld [vmem:[%s508_s0 + $0x50] sm:$0xff]  ;;  %v24_v34 = vld [vmem:[%s508_s0 + $0x48] sm:$0xff] }
   0xa   :  { %354 = vmatprep.mubr.msk.bf16.mxu1 %vm184_vm0, %v29_v20  ;;  %v18_v28 = vld [vmem:[%s508_s0 + $0x18] sm:$0xff]  ;;  %v21_v33 = vld [vmem:[%s508_s0 + $0x30] sm:$0xff]  ;;  %v297_v42 = vld [vmem:[%s509_s2] ss:$0 sm:$0xff] }
   0xb   :  { %323 = vmatpush3.bf16.msra.mxu0 %v363_v5  ;;  %353 = vmatpush3.bf16.msra.mxu1 %v375_v16  ;;  %v22_v29 = vld [vmem:[%s508_s0 + $0x38] sm:$0xff]  ;;  %v27_v31 = vpack.c.bf16 %v18_v28, %v15_v27  ;;  %v30_v35 = vpack.c.bf16 %v24_v34, %v21_v33 }
   0xc   :  { %324 = vmatprep.subr.bf16.mxu0 %v364_v6  ;;  %v31_v32 = vpack.c.bf16 %v25_v30, %v22_v29 }
   0xe   :  { %355 = vmatmul.mubr.msk.bf16.vlgmr.msra.gmra.mrb[0].mxu1 %vm184_vm0, %v32_v23 }
   0xf   :  { %325 = vmatpush3.bf16.msra.mxu0 %v365_v7 }
  0x10   :  { %326 = vmatprep.subr.bf16.mxu0 %v366_v8 }
  0x13   :  { %327 = vmatpush3.bf16.msra.mxu0 %v367_v9 }
  0x14   :  { %328 = vmatprep.subr.bf16.mxu0 %v368_v11 }
  0x17   :  { %329 = vmatpush3.bf16.msra.mxu0 %v369_v14 }
  0x18   :  { %330 = vmatprep.subr.bf16.mxu0 %v370_v19 }
  0x1b   :  { %331 = vmatpush3.bf16.msra.mxu0 %v371_v24 }
  0x1c   :  { %332 = vmatprep.subr.bf16.mxu0 %v372_v25 }
  0x1f   :  { %333 = vmatpush3.bf16.msra.mxu0 %v374_v26 }
  0x22   :  { %224 = vmatmul.mubr.bf16.vlgmr.msra.gmra.mrb[0].mxu0 %v27_v31 }
  0x23   :  { %231 = vmatprep.mubr.bf16.mxu0 %v31_v32 }
  0x2a   :  { %232 = vmatmul.mubr.bf16.gmra.mrb[4].mxu0 %v30_v35 }
  0xe1   :  { %v356_v36 = vpop.f32.mrb[0].mxu1 }
  0xe2   :  { %v274_v37 = vpop.f32.mrb[1].mxu1 }
  0xe3   :  { %v357_v38 = vpop.f32.mrb[2].mxu1 }
  0xe4   :  { %v277_v39 = vpop.f32.mrb[3].mxu1 }
  0xf5   :  { %v334_v40 = vpop.f32.mrb[0].mxu0 }
  0xf6   :  { %v335_v41 = vpop.f32.mrb[1].mxu0 }
  0xf7   :  { %v336_v43 = vadd.f32 %v335_v41, %v334_v40  ;;  %v337_v44 = vpop.f32.mrb[2].mxu0 }
  0xf8   :  { %v338_v45 = vpop.f32.mrb[3].mxu0 }
  0xf9   :  { %v339_v46 = vadd.f32 %v338_v45, %v337_v44  ;;  %v226_v47 = vadd.f32 %v336_v43, %v297_v42 }
  0xfb   :  { %v275_v48 = vadd.f32 %v274_v37, %v226_v47  ;;  %v229_v49 = vadd.f32 %v339_v46, %v297_v42 }
  0xfd   :  { %289 = vst.msk [vmem:[%s510_s3] sm:$0xff] %vm184_vm0, %v275_v48  ;;  %v278_v50 = vadd.f32 %v277_v39, %v229_v49  ;;  %v340_v51 = vpop.f32.mrb[4].mxu0 }
  0xfe   :  { %v341_v52 = vpop.f32.mrb[5].mxu0 }
  0xff   :  { %290 = vst.msk [vmem:[%s510_s3 + $0x8] sm:$0xff] %vm184_vm0, %v278_v50  ;;  %v342_v53 = vadd.f32 %v341_v52, %v340_v51  ;;  %v343_v54 = vpop.f32.mrb[6].mxu0 }
 0x100   :  { %v344_v55 = vpop.f32.mrb[7].mxu0 }
 0x101   :  { %v234_v56 = vadd.f32 %v342_v53, %v297_v42  ;;  %v345_v57 = vadd.f32 %v344_v55, %v343_v54 }
 0x103   :  { %v283_v58 = vadd.f32 %v356_v36, %v234_v56  ;;  %v237_v59 = vadd.f32 %v345_v57, %v297_v42 }
 0x105   :  { %291 = vst.msk [vmem:[%s510_s3 + $0x10] sm:$0xff] %vm184_vm0, %v283_v58  ;;  %v286_v60 = vadd.f32 %v357_v38, %v237_v59 }
 0x107   :  { %292 = vst.msk [vmem:[%s510_s3 + $0x18] sm:$0xff] %vm184_vm0, %v286_v60 }

// kernel: encoder_forward.8
= control target key start
LH: loop header
LB: loop body
LE: loop exit
PB: predicated region body
PF: predicated region fallthrough
CT: control target
= control target key end

     0   :  { %vm192_vm0 = vcmask 261120   ;;  %s639_s2 = inlined_call_operand.vmem [shape: bf16[288,32], index: 2, kind: input, shape index: {}]   ;;  %s640_s0 = inlined_call_operand.vmem [shape: f32[32,288], index: 0, kind: input, shape index: {}]   ;;  %s641_s3 = inlined_call_operand.vmem [shape: bf16[32,32], index: 3, kind: input, shape index: {}]   ;;  %s642_s1 = inlined_call_operand.vmem [shape: f32[32,32], index: 1, kind: input, shape index: {}]   ;;  %s643_s4 = inlined_call_operand.vmem [shape: f32[32,32], index: 4, kind: output, shape index: {}]  }
   0x1   :  { %v466_v0 = vld [vmem:[%s639_s2 + $0x40] sm:$0xff]   ;;  %v468_v2 = vld [vmem:[%s639_s2 + $0x48] sm:$0xff]   ;;  %v470_v4 = vld [vmem:[%s639_s2 + $0x50] sm:$0xff]  }
   0x2   :  { %v467_v1 = vld [vmem:[%s639_s2] sm:$0xff]   ;;  %414 = vmatprep.subr.bf16.mxu0 %v466_v0  ;;  %v469_v3 = vld [vmem:[%s639_s2 + $0x8] sm:$0xff]   ;;  %v471_v5 = vld [vmem:[%s639_s2 + $0x10] sm:$0xff]  }
   0x3   :  { %415 = vmatpush3.bf16.msra.mxu0 %v467_v1  ;;  %v472_v6 = vld [vmem:[%s639_s2 + $0x58] sm:$0xff]   ;;  %v474_v8 = vld [vmem:[%s639_s2 + $0x60] sm:$0xff]   ;;  %v476_v11 = vld [vmem:[%s639_s2 + $0x68] sm:$0xff]  }
   0x4   :  { %416 = vmatprep.subr.bf16.mxu0 %v468_v2  ;;  %v473_v7 = vld [vmem:[%s639_s2 + $0x18] sm:$0xff]   ;;  %v480_v9 = vld [vmem:[%s639_s2 + $0x80] sm:$0xff]   ;;  %v483_v12 = vld [vmem:[%s639_s2 + $0x88] sm:$0xff]  }
   0x5   :  { %v475_v10 = vld [vmem:[%s639_s2 + $0x20] sm:$0xff]   ;;  %450 = vmatprep.subr.bf16.mxu1 %v480_v9  ;;  %v19_v13 = vld [vmem:[%s640_s0 + $0x8] sm:$0xff]  ;;  %v20_v18 = vld [vmem:[%s640_s0 + $0x10] sm:$0xff] }
   0x6   :  { %451 = vmatpush3.bf16.msra.mxu1 %v480_v9  ;;  %v22_v14 = vld [vmem:[%s640_s0 + $0x20] sm:$0xff]  ;;  %v477_v15 = vld [vmem:[%s639_s2 + $0x28] sm:$0xff]   ;;  %v31_v16 = vmax.f32 %v19_v13, 0.0  ;;  %v478_v20 = vld [vmem:[%s639_s2 + $0x70] sm:$0xff]   ;;  %v32_v21 = vmax.f32 %v20_v18, 0.0 }
   0x7   :  { %417 = vmatpush3.bf16.msra.mxu0 %v469_v3  ;;  %452 = vmatprep.subr.bf16.mxu1 %v483_v12  ;;  %v34_v17 = vmax.f32 %v22_v14, 0.0  ;;  %v23_v19 = vld [vmem:[%s640_s0 + $0x28] sm:$0xff]  ;;  %v26_v23 = vld [vmem:[%s640_s0 + $0x40] sm:$0xff]  ;;  %v29_v24 = vld [vmem:[%s640_s0 + $0x58] sm:$0xff] }
   0x8   :  { %418 = vmatprep.subr.bf16.mxu0 %v470_v4  ;;  %v35_v22 = vmax.f32 %v23_v19, 0.0  ;;  %v38_v26 = vmax.f32 %v26_v23, 0.0  ;;  %v41_v27 = vmax.f32 %v29_v24, 0.0  ;;  %v479_v29 = vld [vmem:[%s639_s2 + $0x30] sm:$0xff]   ;;  %v18_v30 = vld [vmem:[%s640_s0] sm:$0xff]  ;;  %v21_v31 = vld [vmem:[%s640_s0 + $0x18] sm:$0xff] }
   0x9   :  { %v43_v25 = vpack.c.bf16 %v34_v17, %v31_v16  ;;  %v481_v33 = vld [vmem:[%s639_s2 + $0x78] sm:$0xff]   ;;  %v28_v35 = vld [vmem:[%s640_s0 + $0x50] sm:$0xff]  ;;  %v30_v36 = vmax.f32 %v18_v30, 0.0  ;;  %v33_v37 = vmax.f32 %v21_v31, 0.0  ;;  %v27_v44 = vld [vmem:[%s640_s0 + $0x48] sm:$0xff] }
   0xa   :  { %453 = vmatpush3.bf16.msra.mxu1 %v483_v12  ;;  %v44_v28 = vpack.c.bf16 %v35_v22, %v32_v21  ;;  %v47_v32 = vpack.c.bf16 %v41_v27, %v38_v26  ;;  %v25_v34 = vld [vmem:[%s640_s0 + $0x38] sm:$0xff]  ;;  %v40_v40 = vmax.f32 %v28_v35, 0.0  ;;  %v24_v43 = vld [vmem:[%s640_s0 + $0x30] sm:$0xff]  ;;  %v39_v46 = vmax.f32 %v27_v44, 0.0  ;;  %v484_v48 = vld [vmem:[%s641_s3] sm:$0xff]  }
   0xb   :  { %419 = vmatpush3.bf16.msra.mxu0 %v471_v5  ;;  %231 = vmatprep.mubr.bf16.mxu0 %v43_v25  ;;  %v482_v38 = vld [vmem:[%s639_s2 + $0x38] sm:$0xff]   ;;  %v37_v39 = vmax.f32 %v25_v34, 0.0  ;;  %v42_v41 = vpack.c.bf16 %v33_v37, %v30_v36  ;;  %v36_v45 = vmax.f32 %v24_v43, 0.0  ;;  %v485_v49 = vld [vmem:[%s641_s3 + $0x8] sm:$0xff]   ;;  %v376_v12 = vld [vmem:[%s642_s1 + $0x10] sm:$0xff] }
   0xc   :  { %420 = vmatprep.subr.bf16.mxu0 %v472_v6  ;;  %454 = vmatprep.mubr.msk.bf16.mxu1 %vm192_vm0, %v44_v28  ;;  %v374_v13 = vld [vmem:[%s642_s1] sm:$0xff]  ;;  %v375_v18 = vld [vmem:[%s642_s1 + $0x8] sm:$0xff] }
   0xd   :  { %455 = vmatmul.mubr.msk.bf16.vlgmr.msra.gmra.mrb[0].mxu1 %vm192_vm0, %v47_v32  ;;  %v46_v42 = vpack.c.bf16 %v40_v40, %v37_v39  ;;  %v45_v47 = vpack.c.bf16 %v39_v46, %v36_v45  ;;  %458 = vmatprep.subr.bf16.mxu1 %v484_v48 }
   0xe   :  { %459 = vmatpush3.bf16.msra.mxu1 %v484_v48 }
   0xf   :  { %421 = vmatpush3.bf16.msra.mxu0 %v473_v7  ;;  %460 = vmatprep.subr.bf16.mxu1 %v485_v49 }
  0x10   :  { %422 = vmatprep.subr.bf16.mxu0 %v474_v8 }
  0x12   :  { %461 = vmatpush3.bf16.msra.mxu1 %v485_v49 }
  0x13   :  { %423 = vmatpush3.bf16.msra.mxu0 %v475_v10 }
  0x14   :  { %424 = vmatprep.subr.bf16.mxu0 %v476_v11 }
  0x17   :  { %425 = vmatpush3.bf16.msra.mxu0 %v477_v15  ;;  %v377_v15 = vld [vmem:[%s642_s1 + $0x18] sm:$0xff] }
  0x18   :  { %426 = vmatprep.subr.bf16.mxu0 %v478_v20 }
  0x1b   :  { %427 = vmatpush3.bf16.msra.mxu0 %v479_v29 }
  0x1c   :  { %428 = vmatprep.subr.bf16.mxu0 %v481_v33 }
  0x1f   :  { %429 = vmatpush3.bf16.msra.mxu0 %v482_v38 }
  0x22   :  { %232 = vmatmul.mubr.bf16.vlgmr.msra.gmra.mrb[0].mxu0 %v42_v41 }
  0x23   :  { %239 = vmatprep.mubr.bf16.mxu0 %v46_v42 }
  0x2a   :  { %240 = vmatmul.mubr.bf16.gmra.mrb[4].mxu0 %v45_v47 }
  0xe0   :  { %v456_v50 = vpop.f32.mrb[0].mxu1 }
  0xe1   :  { %v282_v51 = vpop.f32.mrb[1].mxu1 }
  0xe2   :  { %v457_v52 = vpop.f32.mrb[2].mxu1 }
  0xe3   :  { %v285_v53 = vpop.f32.mrb[3].mxu1 }
  0xf5   :  { %v430_v54 = vpop.f32.mrb[0].mxu0 }
  0xf6   :  { %v431_v55 = vpop.f32.mrb[1].mxu0 }
  0xf7   :  { %v432_v56 = vadd.f32 %v431_v55, %v430_v54  ;;  %v433_v57 = vpop.f32.mrb[2].mxu0 }
  0xf8   :  { %v434_v58 = vpop.f32.mrb[3].mxu0 }
  0xf9   :  { %v435_v59 = vadd.f32 %v434_v58, %v433_v57  ;;  %v283_v60 = vadd.f32 %v432_v56, %v282_v51 }
  0xfb   :  { %v286_v61 = vadd.f32 %v435_v59, %v285_v53  ;;  %v297_v62 = vmax.f32 %v283_v60, 0.0 }
  0xfd   :  { %v298_v63 = vmax.f32 %v286_v61, 0.0  ;;  %v436_v0 = vpop.f32.mrb[4].mxu0 }
  0xfe   :  { %v437_v1 = vpop.f32.mrb[5].mxu0 }
  0xff   :  { %v301_v2 = vpack.c.bf16 %v298_v63, %v297_v62  ;;  %v438_v3 = vadd.f32 %v437_v1, %v436_v0  ;;  %v439_v4 = vpop.f32.mrb[6].mxu0 }
 0x100   :  { %v440_v5 = vpop.f32.mrb[7].mxu0 }
 0x101   :  { %v291_v6 = vadd.f32 %v456_v50, %v438_v3  ;;  %v441_v7 = vadd.f32 %v440_v5, %v439_v4  ;;  %462 = vmatprep.mubr.msk.bf16.mxu1 %vm192_vm0, %v301_v2 }
 0x103   :  { %v294_v8 = vadd.f32 %v457_v52, %v441_v7  ;;  %v299_v9 = vmax.f32 %v291_v6, 0.0 }
 0x105   :  { %v300_v10 = vmax.f32 %v294_v8, 0.0 }
 0x107   :  { %v302_v11 = vpack.c.bf16 %v300_v10, %v299_v9 }
 0x109   :  { %463 = vmatmul.mubr.msk.bf16.vlgmr.msra.gmra.mrb[4].mxu1 %vm192_vm0, %v302_v11 }
 0x1dc   :  { %v464_v14 = vpop.f32.mrb[4].mxu1 }
 0x1dd   :  { %v380_v16 = vadd.f32 %v464_v14, %v376_v12  ;;  %v359_v17 = vpop.f32.mrb[5].mxu1 }
 0x1de   :  { %v378_v19 = vadd.f32 %v374_v13, %v359_v17  ;;  %v465_v20 = vpop.f32.mrb[6].mxu1 }
 0x1df   :  { %384 = vst.msk [vmem:[%s643_s4 + $0x10] sm:$0xff] %vm192_vm0, %v380_v16  ;;  %v381_v21 = vadd.f32 %v465_v20, %v377_v15  ;;  %v362_v22 = vpop.f32.mrb[7].mxu1 }
 0x1e0   :  { %382 = vst.msk [vmem:[%s643_s4] sm:$0xff] %vm192_vm0, %v378_v19  ;;  %v379_v23 = vadd.f32 %v375_v18, %v362_v22 }
 0x1e1   :  { %385 = vst.msk [vmem:[%s643_s4 + $0x18] sm:$0xff] %vm192_vm0, %v381_v21 }
 0x1e2   :  { %383 = vst.msk [vmem:[%s643_s4 + $0x8] sm:$0xff] %vm192_vm0, %v379_v23 }

// kernel: encoder_forward.9
= control target key start
LH: loop header
LB: loop body
LE: loop exit
PB: predicated region body
PF: predicated region fallthrough
CT: control target
= control target key end

     0   :  { %vm199_vm0 = vcmask 261120   ;;  %s813_s0 = inlined_call_operand.vmem [shape: f32[32,288], index: 0, kind: input, shape index: {}]   ;;  %s814_s1 = inlined_call_operand.vmem [shape: f32[32,32], index: 1, kind: input, shape index: {}]   ;;  %s815_s2 = inlined_call_operand.vmem [shape: bf16[288,32], index: 2, kind: input, shape index: {}]   ;;  %s816_s3 = inlined_call_operand.vmem [shape: bf16[32,32], index: 3, kind: input, shape index: {}]   ;;  %s817_s4 = inlined_call_operand.vmem [shape: bf16[32,16], index: 4, kind: input, shape index: {}]   ;;  %s818_s5 = inlined_call_operand.vmem [shape: f32[1,16], index: 5, kind: input, shape index: {}]   ;;  %s819_s6 = inlined_call_operand.hbm [shape: f32[32,16], index: 6, kind: output, shape index: {}]  }
   0x1   :  { %v594_v0 = vld [vmem:[%s815_s2 + $0x40] sm:$0xff]   ;;  %v596_v2 = vld [vmem:[%s815_s2 + $0x48] sm:$0xff]   ;;  %v598_v4 = vld [vmem:[%s815_s2 + $0x50] sm:$0xff]  }
   0x2   :  { %v595_v1 = vld [vmem:[%s815_s2] sm:$0xff]   ;;  %527 = vmatprep.subr.bf16.mxu0 %v594_v0  ;;  %v597_v3 = vld [vmem:[%s815_s2 + $0x8] sm:$0xff]   ;;  %v599_v5 = vld [vmem:[%s815_s2 + $0x10] sm:$0xff]  }
   0x3   :  { %528 = vmatpush3.bf16.msra.mxu0 %v595_v1  ;;  %v600_v6 = vld [vmem:[%s815_s2 + $0x58] sm:$0xff]   ;;  %v602_v8 = vld [vmem:[%s815_s2 + $0x60] sm:$0xff]   ;;  %v604_v11 = vld [vmem:[%s815_s2 + $0x68] sm:$0xff]  }
   0x4   :  { %529 = vmatprep.subr.bf16.mxu0 %v596_v2  ;;  %v601_v7 = vld [vmem:[%s815_s2 + $0x18] sm:$0xff]   ;;  %v608_v9 = vld [vmem:[%s815_s2 + $0x80] sm:$0xff]   ;;  %v611_v12 = vld [vmem:[%s815_s2 + $0x88] sm:$0xff]  }
   0x5   :  { %v603_v10 = vld [vmem:[%s815_s2 + $0x20] sm:$0xff]   ;;  %567 = vmatprep.subr.bf16.mxu1 %v608_v9  ;;  %v26_v13 = vld [vmem:[%s813_s0 + $0x8] sm:$0xff]  ;;  %v27_v18 = vld [vmem:[%s813_s0 + $0x10] sm:$0xff] }
   0x6   :  { %568 = vmatpush3.bf16.msra.mxu1 %v608_v9  ;;  %v29_v14 = vld [vmem:[%s813_s0 + $0x20] sm:$0xff]  ;;  %v605_v15 = vld [vmem:[%s815_s2 + $0x28] sm:$0xff]   ;;  %v38_v16 = vmax.f32 %v26_v13, 0.0  ;;  %v606_v20 = vld [vmem:[%s815_s2 + $0x70] sm:$0xff]   ;;  %v39_v21 = vmax.f32 %v27_v18, 0.0 }
   0x7   :  { %530 = vmatpush3.bf16.msra.mxu0 %v597_v3  ;;  %569 = vmatprep.subr.bf16.mxu1 %v611_v12  ;;  %v41_v17 = vmax.f32 %v29_v14, 0.0  ;;  %v30_v19 = vld [vmem:[%s813_s0 + $0x28] sm:$0xff]  ;;  %v33_v23 = vld [vmem:[%s813_s0 + $0x40] sm:$0xff]  ;;  %v36_v24 = vld [vmem:[%s813_s0 + $0x58] sm:$0xff] }
   0x8   :  { %531 = vmatprep.subr.bf16.mxu0 %v598_v4  ;;  %v42_v22 = vmax.f32 %v30_v19, 0.0  ;;  %v607_v25 = vld [vmem:[%s815_s2 + $0x30] sm:$0xff]   ;;  %v25_v27 = vld [vmem:[%s813_s0] sm:$0xff]  ;;  %v28_v28 = vld [vmem:[%s813_s0 + $0x18] sm:$0xff]  ;;  %v45_v29 = vmax.f32 %v33_v23, 0.0  ;;  %v48_v30 = vmax.f32 %v36_v24, 0.0 }
   0x9   :  { %v50_v26 = vpack.c.bf16 %v41_v17, %v38_v16  ;;  %v609_v31 = vld [vmem:[%s815_s2 + $0x78] sm:$0xff]   ;;  %v35_v35 = vld [vmem:[%s813_s0 + $0x50] sm:$0xff] }
   0xa   :  { %570 = vmatpush3.bf16.msra.mxu1 %v611_v12  ;;  %v51_v32 = vpack.c.bf16 %v42_v22, %v39_v21  ;;  %v32_v33 = vld [vmem:[%s813_s0 + $0x38] sm:$0xff]  ;;  %v54_v34 = vpack.c.bf16 %v48_v30, %v45_v29 }
   0xb   :  { %532 = vmatpush3.bf16.msra.mxu0 %v599_v5  ;;  %238 = vmatprep.mubr.bf16.mxu0 %v50_v26 }
   0xc   :  { %533 = vmatprep.subr.bf16.mxu0 %v600_v6  ;;  %571 = vmatprep.mubr.msk.bf16.mxu1 %vm199_vm0, %v51_v32 }
   0xd   :  { %572 = vmatmul.mubr.msk.bf16.vlgmr.msra.gmra.mrb[0].mxu1 %vm199_vm0, %v54_v34 }
   0xf   :  { %534 = vmatpush3.bf16.msra.mxu0 %v601_v7 }
  0x10   :  { %535 = vmatprep.subr.bf16.mxu0 %v602_v8 }
  0x13   :  { %536 = vmatpush3.bf16.msra.mxu0 %v603_v10 }
  0x14   :  { %537 = vmatprep.subr.bf16.mxu0 %v604_v11 }
  0x17   :  { %538 = vmatpush3.bf16.msra.mxu0 %v605_v15 }
  0x18   :  { %539 = vmatprep.subr.bf16.mxu0 %v606_v20 }
  0x19   :  { %11 = vsyncpa [#allocation3], 0  ;;  %v37_v36 = vmax.f32 %v25_v27, 0.0  ;;  %v40_v37 = vmax.f32 %v28_v28, 0.0  ;;  %v610_v38 = vld [vmem:[%s815_s2 + $0x38] sm:$0xff]   ;;  %v44_v39 = vmax.f32 %v32_v33, 0.0 }
  0x1a   :  { %v47_v40 = vmax.f32 %v35_v35, 0.0  ;;  %v31_v43 = vld [vmem:[%s813_s0 + $0x30] sm:$0xff]  ;;  %v34_v44 = vld [vmem:[%s813_s0 + $0x48] sm:$0xff]  ;;  %v612_v48 = vld [vmem:[%s816_s3] sm:$0xff]   ;;  %vm477_vm1 = vcmask 130048   ;;  %s640_s22 = smov [#allocation2]  }
  0x1b   :  { %540 = vmatpush3.bf16.msra.mxu0 %v607_v25  ;;  %v49_v41 = vpack.c.bf16 %v40_v37, %v37_v36  ;;  %v43_v45 = vmax.f32 %v31_v43, 0.0  ;;  %v46_v46 = vmax.f32 %v34_v44, 0.0  ;;  %575 = vmatprep.subr.bf16.mxu1 %v612_v48  ;;  %v613_v49 = vld [vmem:[%s816_s3 + $0x8] sm:$0xff]   ;;  %v614_v12 = vld [vmem:[%s817_s4] sm:$0xff]   ;;  %v383_v14 = vld [vmem:[%s814_s1 + $0x10] sm:$0xff]  ;;  %s487_s23 = sshll.u32 %s640_s22, 4  ;;  %s488_s23 = int_to_ptr.vmem [resolvable:$true] %s487_s23 }
  0x1c   :  { %541 = vmatprep.subr.bf16.mxu0 %v609_v31  ;;  %v53_v42 = vpack.c.bf16 %v47_v40, %v44_v39  ;;  %576 = vmatpush3.bf16.msra.mxu1 %v612_v48  ;;  %v615_v13 = vld [vmem:[%s817_s4 + $0x8] sm:$0xff]   ;;  %v381_v15 = vld [vmem:[%s814_s1] sm:$0xff]  ;;  %v384_v17 = vld [vmem:[%s814_s1 + $0x18] sm:$0xff]  ;;  %s616_s24 = scalar_lea.vmem %s488_s23, 512  ;;  %p621_p1 = scmp.lt.s32.totalorder %s488_s23, %s488_s23 }
  0x1d   :  { %v52_v47 = vpack.c.bf16 %v46_v46, %v43_v45  ;;  %577 = vmatprep.subr.bf16.mxu1 %v613_v49  ;;  %v382_v20 = vld [vmem:[%s814_s1 + $0x8] sm:$0xff]  ;;  %v522_v36 = vld [vmem:[%s818_s5] ss:$0 sm:$0xff]  ;;  %p617_p0 = scmp.ne.s32.totalorder %s488_s23, %s616_s24  ;;  %p622_p2 = scmp.lt.s32.totalorder %s616_s24, %s616_s24 }
  0x1f   :  { %542 = vmatpush3.bf16.msra.mxu0 %v610_v38  ;;  %p623_p3 = por %p622_p2, %p621_p1 }
  0x20   :  { %578 = vmatpush3.bf16.msra.mxu1 %v613_v49 }
  0x21   :  { %583 = vmatprep.subr.bf16.mxu1 %v614_v12  ;;  %p624_p4 = pnand %p623_p3, %p617_p0 }
  0x22   :  { %239 = vmatmul.mubr.bf16.vlgmr.msra.gmra.mrb[0].mxu0 %v49_v41 }
  0x23   :  { %246 = vmatprep.mubr.bf16.mxu0 %v53_v42 }
  0x2a   :  { %247 = vmatmul.mubr.bf16.gmra.mrb[4].mxu0 %v52_v47 }
  0xe0   :  { %v573_v50 = vpop.f32.mrb[0].mxu1 }
  0xe1   :  { %v289_v51 = vpop.f32.mrb[1].mxu1 }
  0xe2   :  { %v574_v52 = vpop.f32.mrb[2].mxu1 }
  0xe3   :  { %v292_v53 = vpop.f32.mrb[3].mxu1 }
  0xf5   :  { %v543_v54 = vpop.f32.mrb[0].mxu0 }
  0xf6   :  { %v544_v55 = vpop.f32.mrb[1].mxu0 }
  0xf7   :  { %v545_v56 = vadd.f32 %v544_v55, %v543_v54  ;;  %v546_v57 = vpop.f32.mrb[2].mxu0 }
  0xf8   :  { %v547_v58 = vpop.f32.mrb[3].mxu0 }
  0xf9   :  { %v548_v59 = vadd.f32 %v547_v58, %v546_v57  ;;  %v290_v60 = vadd.f32 %v545_v56, %v289_v51 }
  0xfb   :  { %v293_v61 = vadd.f32 %v548_v59, %v292_v53  ;;  %v304_v62 = vmax.f32 %v290_v60, 0.0 }
  0xfd   :  { %v305_v63 = vmax.f32 %v293_v61, 0.0  ;;  %v549_v0 = vpop.f32.mrb[4].mxu0 }
  0xfe   :  { %v550_v1 = vpop.f32.mrb[5].mxu0 }
  0xff   :  { %v308_v2 = vpack.c.bf16 %v305_v63, %v304_v62  ;;  %v551_v3 = vadd.f32 %v550_v1, %v549_v0  ;;  %v552_v4 = vpop.f32.mrb[6].mxu0 }
 0x100   :  { %v553_v5 = vpop.f32.mrb[7].mxu0 }
 0x101   :  { %v298_v6 = vadd.f32 %v573_v50, %v551_v3  ;;  %v554_v7 = vadd.f32 %v553_v5, %v552_v4  ;;  %579 = vmatprep.mubr.msk.bf16.mxu1 %vm199_vm0, %v308_v2 }
 0x103   :  { %v301_v8 = vadd.f32 %v574_v52, %v554_v7  ;;  %v306_v9 = vmax.f32 %v298_v6, 0.0 }
 0x105   :  { %v307_v10 = vmax.f32 %v301_v8, 0.0 }
 0x107   :  { %v309_v11 = vpack.c.bf16 %v307_v10, %v306_v9 }
 0x109   :  { %580 = vmatmul.mubr.msk.bf16.vlgmr.msra.gmra.mrb[4].mxu1 %vm199_vm0, %v309_v11 }
 0x10a   :  { %584 = vmatpush3.bf16.msra.mxu1 %v614_v12 }
 0x10b   :  { %585 = vmatprep.subr.bf16.mxu1 %v615_v13 }
 0x10e   :  { %586 = vmatpush3.bf16.msra.mxu1 %v615_v13 }
 0x1dc   :  { %v581_v16 = vpop.f32.mrb[4].mxu1 }
 0x1dd   :  { %v387_v18 = vadd.f32 %v581_v16, %v383_v14  ;;  %v366_v19 = vpop.f32.mrb[5].mxu1 }
 0x1de   :  { %v385_v21 = vadd.f32 %v381_v15, %v366_v19  ;;  %v582_v22 = vpop.f32.mrb[6].mxu1 }
 0x1df   :  { %v391_v23 = vmul.f32 0.01, %v387_v18  ;;  %v388_v24 = vadd.f32 %v582_v22, %v384_v17  ;;  %v369_v25 = vpop.f32.mrb[7].mxu1 }
 0x1e0   :  { %v389_v26 = vmul.f32 0.01, %v385_v21  ;;  %v386_v27 = vadd.f32 %v382_v20, %v369_v25 }
 0x1e1   :  { %v392_v28 = vmul.f32 0.01, %v388_v24  ;;  %v395_v30 = vmax.f32 %v387_v18, %v391_v23 }
 0x1e2   :  { %v390_v29 = vmul.f32 0.01, %v386_v27  ;;  %v393_v32 = vmax.f32 %v385_v21, %v389_v26 }
 0x1e3   :  { %v396_v31 = vmax.f32 %v388_v24, %v392_v28 }
 0x1e4   :  { %v394_v33 = vmax.f32 %v386_v27, %v390_v29 }
 0x1e5   :  { %v398_v34 = vpack.c.bf16 %v396_v31, %v395_v30 }
 0x1e6   :  { %v397_v35 = vpack.c.bf16 %v394_v33, %v393_v32 }
 0x1e8   :  { %587 = vmatprep.mubr.msk.bf16.mxu1 %vm199_vm0, %v397_v35 }
 0x1e9   :  { %588 = vmatmul.mubr.msk.bf16.vlgmr.msra.gmra.mrb[8].mxu1 %vm199_vm0, %v398_v34 }
 0x2bc   :  { %v589_v37 = vpop.f32.mrb[8].mxu1 }
 0x2bd   :  { %v471_v38 = vadd.f32 %v589_v37, %v522_v36  ;;  %v462_v39 = vpop.f32.mrb[9].mxu1 }
 0x2be   :  { %v463_v40 = vadd.f32 %v522_v36, %v462_v39  ;;  %v590_v41 = vpop.f32.mrb[10].mxu1 }
 0x2bf   :  { %480 = vst.msk [vmem:[#allocation2 + $0x10] sm:$0xff] %vm477_vm1, %v471_v38  ;;  %v474_v42 = vadd.f32 %v590_v41, %v522_v36  ;;  %v465_v43 = vpop.f32.mrb[11].mxu1 }
 0x2c0   :  { %478 = vst.msk [vmem:[#allocation2] sm:$0xff] %vm477_vm1, %v463_v40  ;;  %v466_v44 = vadd.f32 %v522_v36, %v465_v43 }
 0x2c1   :  { %481 = vst.msk [vmem:[#allocation2 + $0x18] sm:$0xff] %vm477_vm1, %v474_v42 }
 0x2c2   :  { %479 = vst.msk [vmem:[#allocation2 + $0x8] sm:$0xff] %vm477_vm1, %v466_v44 }
 0x2c3   :  { %627 = shalt.err (!%p624_p4)
}
 0x2c4   :  { %s628_s26 = scalar_lea.hbm %s819_s6, 512 }
 0x2c5   :  { %p629_p5 = scmp.ne.s32.totalorder %s819_s6, %s628_s26  ;;  %p632_p6 = scmp.lt.u32.totalorder %s628_s26, %s819_s6 }
 0x2c7   :  { %p634_p7 = pnand %p632_p6, %p629_p5 }
 0x2c9   :  { %637 = shalt.err (!%p634_p7)
}
 0x2ca   :  { %s641_s7 = smov 128   ;;  %s642_s8 = smov 8  }
 0x2cb   :  { %493 = dma.vmem_to_hbm [thread:$0]  %s488_s23, 512, %s819_s6, [#allocation3], %s641_s7, %s641_s7, %s642_s8  }
 0x2cc   :  { %638 = dma.done.wait [#allocation3], 512  }
 0x2cd   :  { %639 = vsyncadd [#allocation3], 4294966784 }
 0x2ce   :  { %497 = vsyncpa [#allocation3], 1 }

</bundles_post_ra>
